<compile_context>
chip_gen: v5e
topology: v5e:2x2
jax: 0.10.0
libtpu: 0.0.40
codegen_flags: <defaults>
</compile_context>

<pallas_src>
import functools

import jax
import jax.numpy as jnp
from jax.experimental import pallas as pl
from jax.experimental.pallas import tpu as pltpu


def _motion_loss_kernel(x_ref, p_ref, loss_ref, *, bz, frame):
    """Fully fused forward: shifted-pair build, generator heads, masked MSE.

    x_ref    : (bz*frame, d)   f32 VMEM  [mean_flat || var_flat] per frame
    p_ref    : (2d+1, H*d)     f32 VMEM  packed [W_heads ; -I per head ; bias]
    loss_ref : (1, 1)          f32 SMEM  scalar loss output
    """
    n, d = x_ref.shape
    two_d = 2 * d
    n_heads = p_ref.shape[-1] // d

    x = x_ref[...]                               # (n, d)
    # prev / next frame rows over the whole batch-flattened slab (done ONCE);
    # batch-boundary pairs are masked out below.
    x_prev = x[: n - 1, :]                       # rows 0 .. n-2
    x_next = x[1:, :]                            # rows 1 .. n-1
    xin = jnp.concatenate([x_prev, x_next], axis=-1)   # (n-1, 2d)

    wt = p_ref[0:two_d, :]                       # (2d, H*d): [W ; -I per head]
    b = p_ref[two_d:two_d + 1, :]                # (1, H*d) biases

    # One MXU matmul emits (pred_h - target) for every head simultaneously.
    out = jnp.dot(xin, wt, preferred_element_type=jnp.float32) + b   # (n-1, H*d)

    # Mask rows whose "previous frame" is the last frame of its batch.
    row = jax.lax.broadcasted_iota(jnp.int32, out.shape, 0)
    valid = (row % frame) != (frame - 1)
    diff = jnp.where(valid, out, 0.0)

    # Summing per-head squared errors and dividing once by N*D reproduces
    # mse(t, pred) + mse(t, pred_adv)   (both heads share the element count).
    ssq = jnp.sum(diff * diff)
    loss_ref[0, 0] = ssq * (1.0 / (bz * (frame - 1) * d))


def motion_generator_full_model(kp_mean, kp_var, packed_params):
    """JAX wrapper reproducing MotionGeneratorFullModel.forward.

    kp_mean: (bz, frame, kp, 2)   kp_var: (bz, frame, kp, 2, 2)
    packed_params: (2D+1, H*D) packed generator weights (see init_generator_params)
    Returns a scalar f32 loss.
    """
    bz, frame, kp, _ = kp_mean.shape
    assert frame >= 2, "need at least two frames to form (prev -> next) pairs"
    d = kp * 2 + kp * 4
    n_heads = packed_params.shape[-1] // d
    assert packed_params.shape == (2 * d + 1, n_heads * d)

    # Contiguous trailing-dim collapse + one lane concat in XLA so the kernel
    # gets a single activation slab (2 input DMAs total instead of 3).
    mean_flat = kp_mean.reshape(bz, frame, kp * 2).astype(jnp.float32)
    var_flat = kp_var.reshape(bz, frame, kp * 4).astype(jnp.float32)
    x_all = jnp.concatenate([mean_flat, var_flat], axis=-1).reshape(bz * frame, d)

    n = bz * frame
    flops = 2 * (n - 1) * (2 * d) * (n_heads * d) + 4 * (n - 1) * (n_heads * d)
    bytes_accessed = x_all.size * 4 + packed_params.size * 4 + 4

    kernel = functools.partial(_motion_loss_kernel, bz=bz, frame=frame)
    loss = pl.pallas_call(
        kernel,
        out_shape=jax.ShapeDtypeStruct((1, 1), jnp.float32),
        in_specs=[pl.BlockSpec(memory_space=pltpu.MemorySpace.VMEM)] * 2,
        out_specs=pl.BlockSpec(memory_space=pltpu.MemorySpace.SMEM),
        cost_estimate=pl.CostEstimate(
            flops=flops, transcendentals=0, bytes_accessed=bytes_accessed),
    )(x_all, packed_params)
    return loss[0, 0]


def init_generator_params(key, d, *, adversarial=True):
    """Synthetic linear generator packed into one (2D+1, H*D) slab.

    Rows 0..D-1  : main (and adversarial) head weights side by side.
    Rows D..2D-1 : -I_D tiled per head (lets the kernel fold the target
                   subtraction directly into the MXU matmul).
    Row  2D      : biases.
    Packed once at init so the per-step forward issues a single parameter DMA.
    """
    n_heads = 2 if adversarial else 1
    kw, kb = jax.random.split(key)
    w = jax.random.normal(kw, (d, n_heads * d), jnp.float32) * 0.1
    b = jax.random.normal(kb, (1, n_heads * d), jnp.float32) * 0.01
    neg_eye = -jnp.tile(jnp.eye(d, dtype=jnp.float32), (1, n_heads))
    return jnp.concatenate([w, neg_eye, b], axis=0)   # (2d+1, n_heads*d)


def _reference_loss(kp_mean, kp_var, packed_params):
    """Pure-JAX reference mirroring the PyTorch forward (for validation)."""
    bz, frame = kp_mean.shape[:2]
    mean_flat = kp_mean.reshape(bz, frame, -1)
    var_flat = kp_var.reshape(bz, frame, -1)
    target = jnp.concatenate([mean_flat[:, 1:], var_flat[:, 1:]], -1)
    gen_in = jnp.concatenate([mean_flat[:, :-1], var_flat[:, :-1]], -1)
    d = target.shape[-1]
    n = bz * (frame - 1)
    x = gen_in.reshape(n, d).astype(jnp.float32)
    t = target.reshape(n, d).astype(jnp.float32)
    n_heads = packed_params.shape[-1] // d
    w = packed_params[:d]
    b = packed_params[2 * d:2 * d + 1]
    pred = jnp.dot(x, w) + b
    loss = jnp.float32(0.0)
    for h in range(n_heads):
        loss = loss + jnp.mean((t - pred[:, h * d:(h + 1) * d]) ** 2)
    return loss


if __name__ == "__main__":
    key = jax.random.PRNGKey(0)
    k_mean, k_var, k_param = jax.random.split(key, 3)

    bz, frame, kp = 2, 8, 4
    kp_mean = jax.random.normal(k_mean, (bz, frame, kp, 2), jnp.float32)
    kp_var = jax.random.normal(k_var, (bz, frame, kp, 2, 2), jnp.float32)

    d_feat = kp * 2 + kp * 4                       # 24
    params = init_generator_params(k_param, d_feat, adversarial=True)

    fwd = jax.jit(motion_generator_full_model)
    loss = jax.block_until_ready(fwd(kp_mean, kp_var, params))
    ref = jax.block_until_ready(_reference_loss(kp_mean, kp_var, params))

    assert loss.shape == () and bool(jnp.isfinite(loss))
    # 5e-3: the kernel routes the target through the default-precision MXU
    # pass (subtraction folded into the matmul), so tiny rounding differences
    # vs. the exact-f32-subtract reference are expected.
    assert bool(jnp.allclose(loss, ref, rtol=5e-3, atol=5e-3)), (loss, ref)
    print("KERNEL_OK")
</pallas_src>

<mosaic_0001>
module attributes {stable_mosaic.version = 11 : i64} {
  func.func @_motion_loss_kernel(%arg0: memref<16x24xf32, #tpu.memory_space<vmem>>, %arg1: memref<49x48xf32, #tpu.memory_space<vmem>>, %arg2: memref<1x1xf32, #tpu.memory_space<smem>>) attributes {dimension_semantics = [], scalar_prefetch = 0 : i64, scratch_operands = 0 : i64, tpu.core_type = #tpu.core_type<tc>} {
    %c0 = arith.constant 0 : index
    %c0_0 = arith.constant 0 : index
    %0 = vector.load %arg0[%c0, %c0_0] : memref<16x24xf32, #tpu.memory_space<vmem>>, vector<16x24xf32>
    %1 = vector.extract_strided_slice %0 {offsets = [0, 0], sizes = [15, 24], strides = [1, 1]} : vector<16x24xf32> to vector<15x24xf32>
    %2 = vector.extract_strided_slice %0 {offsets = [1, 0], sizes = [15, 24], strides = [1, 1]} : vector<16x24xf32> to vector<15x24xf32>
    %3 = tpu.concatenate %1, %2 in 1 : vector<15x24xf32>, vector<15x24xf32> -> vector<15x48xf32>
    %c0_1 = arith.constant 0 : index
    %c0_2 = arith.constant 0 : index
    %4 = vector.load %arg1[%c0_1, %c0_2] : memref<49x48xf32, #tpu.memory_space<vmem>>, vector<48x48xf32>
    %c48 = arith.constant 48 : index
    %c0_3 = arith.constant 0 : index
    %5 = vector.load %arg1[%c48, %c0_3] : memref<49x48xf32, #tpu.memory_space<vmem>>, vector<1x48xf32>
    %cst = arith.constant dense<0.000000e+00> : vector<15x48xf32>
    %6 = tpu.matmul %3, %4, %cst {dimension_numbers = #tpu.dot_dimension_numbers<[1], [0], [0], [1], [0, 0, 1, 1], [], []>} : vector<15x48xf32>, vector<48x48xf32>, vector<15x48xf32> -> vector<15x48xf32>
    %7 = vector.broadcast %5 : vector<1x48xf32> to vector<15x48xf32>
    %8 = arith.addf %6, %7 : vector<15x48xf32>
    %9 = tpu.iota {dimensions = array<i32: 0>} : vector<15x48xi32>
    %c8_i32 = arith.constant 8 : i32
    %c0_i32 = arith.constant 0 : i32
    %10 = arith.cmpi eq, %c8_i32, %c0_i32 : i32
    %c1_i32 = arith.constant 1 : i32
    %11 = arith.select %10, %c1_i32, %c8_i32 : i32
    %12 = vector.broadcast %11 : i32 to vector<15x48xi32>
    %13 = arith.remsi %9, %12 : vector<15x48xi32>
    %c0_i32_4 = arith.constant 0 : i32
    %14 = vector.broadcast %c0_i32_4 : i32 to vector<15x48xi32>
    %15 = arith.cmpi ne, %13, %14 : vector<15x48xi32>
    %c0_i32_5 = arith.constant 0 : i32
    %16 = vector.broadcast %c0_i32_5 : i32 to vector<15x48xi32>
    %17 = arith.cmpi slt, %13, %16 : vector<15x48xi32>
    %c0_i32_6 = arith.constant 0 : i32
    %18 = arith.cmpi slt, %11, %c0_i32_6 : i32
    %19 = vector.broadcast %18 : i1 to vector<15x48xi1>
    %20 = vector.broadcast %19 : vector<15x48xi1> to vector<15x48xi1>
    %21 = arith.xori %17, %20 : vector<15x48xi1>
    %22 = arith.andi %21, %15 : vector<15x48xi1>
    %23 = vector.broadcast %11 : i32 to vector<15x48xi32>
    %24 = arith.addi %13, %23 : vector<15x48xi32>
    %25 = arith.select %22, %24, %13 : vector<15x48xi1>, vector<15x48xi32>
    %c7_i32 = arith.constant 7 : i32
    %26 = vector.broadcast %c7_i32 : i32 to vector<15x48xi32>
    %27 = arith.cmpi ne, %25, %26 : vector<15x48xi32>
    %cst_7 = arith.constant 0.000000e+00 : f32
    %28 = vector.broadcast %cst_7 : f32 to vector<15x48xf32>
    %29 = arith.select %27, %8, %28 : vector<15x48xi1>, vector<15x48xf32>
    %30 = arith.mulf %29, %29 : vector<15x48xf32>
    %31 = vector.shape_cast %30 : vector<15x48xf32> to vector<1x15x48xf32>
    %cst_8 = arith.constant dense<0.000000e+00> : vector<1xf32>
    %32 = vector.multi_reduction <add>, %31, %cst_8 [1, 2] : vector<1x15x48xf32> to vector<1xf32>
    %33 = vector.shape_cast %32 : vector<1xf32> to vector<1x1x1xf32>
    %34 = vector.extract %33[0, 0, 0] : f32 from vector<1x1x1xf32>
    %cst_9 = arith.constant 0.00297619053 : f32
    %35 = arith.mulf %34, %cst_9 : f32
    %c0_10 = arith.constant 0 : index
    %c0_11 = arith.constant 0 : index
    %36 = memref.load %arg2[%c0_10, %c0_11] : memref<1x1xf32, #tpu.memory_space<smem>>
    memref.store %35, %arg2[%c0_10, %c0_11] : memref<1x1xf32, #tpu.memory_space<smem>>
    return
  }
}

</mosaic_0001>

<bundles_post_ra>
// kernel: motion_generator_full_model.1
= control target key start
LH: loop header
LB: loop body
LE: loop exit
PB: predicated region body
PF: predicated region fallthrough
CT: control target
= control target key end

     0   :  { %vm16_vm0 = vcmask 1046528   ;;  %s208_s0 = inlined_call_operand.vmem [shape: f32[16,24], index: 0, kind: input, shape index: {}]   ;;  %s209_s1 = inlined_call_operand.vmem [shape: f32[49,48], index: 1, kind: input, shape index: {}]   ;;  %s210_s2 = inlined_call_operand.hbm [shape: f32[1,1], index: 2, kind: output, shape index: {}]  }
   0x1   :  { %v12_v0 = vld [vmem:[%s208_s0] sm:$0xff]  ;;  %v13_v1 = vld [vmem:[%s208_s0 + $0x8] sm:$0xff]  ;;  %v32_v6 = vld [vmem:[%s209_s1 + $0x18] sm:$0xff] }
   0x2   :  { %v34_v2 = vld [vmem:[%s209_s1 + $0x28] sm:$0xff]  ;;  %v17_v3 = vrot.slane %v12_v0, 1  ;;  %v18_v4 = vrot.slane %v13_v1, 1  ;;  %v33_v5 = vld [vmem:[%s209_s1 + $0x20] sm:$0xff] }
   0x3   :  { %54 = vmatpush.msra.mxu0 %v34_v2  ;;  %133 = vmatpush.msra.mxu1 %v34_v2 }
   0x4   :  { %7 = vsyncpa [#allocation3], 0  ;;  %v19_v7 = vsel %vm16_vm0, %v17_v3, %v18_v4  ;;  %s158_s0 = smov 24   ;;  %v31_v8 = vld [vmem:[%s209_s1 + $0x10] sm:$0xff]  ;;  %v30_v9 = vld [vmem:[%s209_s1 + $0x8] sm:$0xff]  ;;  %vm26_vm1 = vcmask 195584   ;;  %v67_v15 = vlaneseq }
   0x5   :  { %55 = vmatpush.msra.mxu0 %v33_v5  ;;  %134 = vmatpush.msra.mxu1 %v33_v5  ;;  %v29_v10 = vld [vmem:[%s209_s1] sm:$0xff]  ;;  %vm37_vm2 = vcmask 392192   ;;  %v143_v17 = vld [vmem:[%s209_s1 + $0x30] ss:$0 sm:$0xff]  ;;  %vm101_vm5 = vcmask 391168   ;;  %s121_s28 = sshll.u32 %s210_s2, 4  ;;  %s122_s28 = int_to_ptr.hbm [resolvable:$true] %s121_s28 }
   0x6   :  { %20 = vrot.lane.b32.xlu0 %v19_v7, %s158_s0  ;;  %v68_v16 = vshrl.u32 %v67_v15, 7  ;;  %s159_s3 = smov [#allocation2]  }
   0x7   :  { %56 = vmatpush.msra.mxu0 %v32_v6  ;;  %135 = vmatpush.msra.mxu1 %v32_v6 }
   0x8   :  { %v74_v19 = vand.u32 7, %v68_v16  ;;  %v69_v20 = vadd.s32 8, %v68_v16 }
   0x9   :  { %57 = vmatpush.msra.mxu0 %v31_v8  ;;  %136 = vmatpush.msra.mxu1 %v31_v8 }
   0xa   :  { %vm94_vm3 = vcmp.ne.s32.totalorder %v74_v19, 7  ;;  %v81_v22 = vand.u32 7, %v69_v20 }
   0xb   :  { %58 = vmatpush.msra.mxu0 %v30_v9  ;;  %137 = vmatpush.msra.mxu1 %v30_v9 }
   0xc   :  { %vm95_vm4 = vcmp.ne.s32.totalorder %v81_v22, 7 }
   0xd   :  { %59 = vmatpush.msra.mxu0 %v29_v10  ;;  %138 = vmatpush.msra.mxu1 %v29_v10 }
   0xe   :  { %22 = vrot.lane.b32.xlu0 %v18_v4, %s158_s0 }
  0x78   :  { %v21_v11 = vpop.permute.xlu0 %20 }
  0x79   :  { %v27_v12 = vsel %vm26_vm1, %v12_v0, %v21_v11 }
  0x7a   :  { %131 = vmatmul.msk.f32.vlgmr.msra.gmra.mxu0 %vm37_vm2, %v27_v12 }
  0x80   :  { %v23_v13 = vpop.permute.xlu0 %22 }
  0x81   :  { %v28_v14 = vsel %vm26_vm1, %v13_v1, %v23_v13 }
  0x82   :  { %132 = vmatmul.msk.f32.vlgmr.msra.gmra.mxu1 %vm37_vm2, %v28_v14 }
  0xf7   :  { %v61_v18 = vpop.f32.mrf.mxu0 }
  0xf8   :  { %v62_v21 = vadd.f32 %v143_v17, %v61_v18 }
  0xfa   :  { %v96_v23 = vsel %vm94_vm3, %v62_v21, 0.0 }
  0xfb   :  { %v98_v26 = vmul.f32 %v96_v23, %v96_v23 }
  0xfd   :  { %v100_v29 = vsel %vm37_vm2, %v98_v26, 0.0 }
  0xff   :  { %v64_v24 = vpop.f32.mrf.mxu1 }
 0x100   :  { %v65_v25 = vadd.f32 %v143_v17, %v64_v24 }
 0x102   :  { %v97_v27 = vsel %vm95_vm4, %v65_v25, 0.0 }
 0x103   :  { %v99_v28 = vmul.f32 %v97_v27, %v97_v27 }
 0x105   :  { %v102_v30 = vsel %vm101_vm5, %v99_v28, 0.0 }
 0x106   :  { %v103_v31 = vadd.f32 %v102_v30, %v100_v29 }
 0x108   :  { %104 = vadd.xlane.f32.xlu1 %v103_v31 }
 0x17b   :  { %v105_v32 = vpop.xlane.xlu1 %104 }
 0x17c   :  { %v106_v33 = vrot.slane %v105_v32, 4 }
 0x17e   :  { %v107_v34 = vadd.f32 %v106_v33, %v105_v32 }
 0x180   :  { %v108_v35 = vrot.slane %v107_v34, 2 }
 0x182   :  { %v109_v36 = vadd.f32 %v108_v35, %v107_v34 }
 0x184   :  { %v110_v37 = vrot.slane %v109_v36, 1 }
 0x186   :  { %v111_v38 = vadd.f32 %v110_v37, %v109_v36 }
 0x188   :  { %139 = vpush %v111_v38 }
 0x1b9   :  { %s140_s29 = spop %139 }
 0x1ba   :  { %s113_s30 = smul.f32 0.0029761905, %s140_s29 }
 0x1bc   :  { %115 = sst [smem:[#allocation2]] %s113_s30 }
 0x1bd   :  { %124 = dma.smem_to_hbm %s159_s3, 16, %s122_s28, [#allocation3]  }
 0x1be   :  { %156 = dma.done.wait [#allocation3], 16  }
 0x1bf   :  { %157 = vsyncadd [#allocation3], 4294967280 }
 0x1c0   :  { %129 = sfence }
 0x1c1   :  { %130 = vsyncpa [#allocation3], 1 }

</bundles_post_ra>
